<compile_context>
chip_gen: v7x
topology: tpu7x:2x2x1
jax: 0.10.0
libtpu: 0.0.40
codegen_flags: <defaults>
</compile_context>

<pallas_src>
import jax
import jax.numpy as jnp
from jax.experimental import pallas as pl
from jax.experimental.pallas import tpu as pltpu

SEQ = 8
BATCH = 2
HIDDEN = 32
HEADS = 4
HEAD_DIM = HIDDEN // HEADS
EPS = 1e-5
NEG = -1e9


def encoder_layer_kernel(src_ref, mask_ref, in_wt_ref, w_stack_ref,
                         in_b_ref, vecs_ref, o_ref):
    E = HIDDEN

    x = src_ref[...].astype(jnp.float32)              # (R, E) fused seq+batch rows
    mask = mask_ref[...]                               # (R, R) block-diag additive mask

    in_wt = in_wt_ref[...]                             # (E, 3E) bf16 == in_proj_weight.T
    w_stack = w_stack_ref[...]                         # (3E, E) bf16
    # sublane slices at multiples of 8 -> essentially free views
    out_wt = w_stack[:E, :]                            # out_proj.weight.T
    w1t = w_stack[E:2 * E, :]                          # linear1.weight.T
    w2t = w_stack[2 * E:, :]                           # linear2.weight.T

    in_b = in_b_ref[...].astype(jnp.float32)           # (1, 3E)
    vecs = vecs_ref[...].astype(jnp.float32)           # (8, E), row-packed vectors
    out_b = vecs[0:1, :]
    b1 = vecs[1:2, :]
    b2 = vecs[2:3, :]
    g1 = vecs[3:4, :]
    bt1 = vecs[4:5, :]
    g2 = vecs[5:6, :]
    bt2 = vecs[6:7, :]

    # ---- fused QKV projection (bf16 operands, f32 accumulate) ----
    qkv = jnp.dot(x.astype(jnp.bfloat16), in_wt,
                  preferred_element_type=jnp.float32) + in_b      # (R, 3E) f32
    qkv_bf = qkv.astype(jnp.bfloat16)
    scale = 1.0 / (HEAD_DIM ** 0.5)

    # ---- multi-head attention: loop over heads only (batch handled by mask) ----
    pv_heads = []
    for h in range(HEADS):                              # static unrolled
        lo = h * HEAD_DIM
        qh = qkv_bf[:, lo:lo + HEAD_DIM]
        kh = qkv_bf[:, E + lo:E + lo + HEAD_DIM]
        vh = qkv_bf[:, 2 * E + lo:2 * E + lo + HEAD_DIM]
        # q @ k^T without an explicit transpose (contract last dims)
        s = jax.lax.dot_general(qh, kh, (((1,), (1,)), ((), ())),
                                preferred_element_type=jnp.float32)   # (R, R)
        s = s * scale + mask
        s = s - jnp.max(s, axis=-1, keepdims=True)
        p = jnp.exp(s)
        p = p * pl.reciprocal(jnp.sum(p, axis=-1, keepdims=True), approx=True)
        pv_heads.append(jnp.dot(p.astype(jnp.bfloat16), vh,
                                preferred_element_type=jnp.float32))  # (R, Dh)

    # single output projection (one (R,E)@(E,E) matmul instead of HEADS tiny ones)
    pv = jnp.concatenate(pv_heads, axis=-1)                           # (R, E)
    attn = jnp.dot(pv.astype(jnp.bfloat16), out_wt,
                   preferred_element_type=jnp.float32) + out_b        # (R, E)

    # ---- residual (dropout == identity) + LayerNorm 1 (f32) ----
    rc1 = x + attn
    mu1 = jnp.mean(rc1, axis=-1, keepdims=True)
    var1 = jnp.mean((rc1 - mu1) ** 2, axis=-1, keepdims=True)
    src1 = (rc1 - mu1) * jax.lax.rsqrt(var1 + EPS) * g1 + bt1

    # ---- feed-forward: linear2(relu(linear1(x))) ----
    h1 = jnp.dot(src1.astype(jnp.bfloat16), w1t,
                 preferred_element_type=jnp.float32) + b1
    h1 = jnp.maximum(h1, 0.0)
    ff = jnp.dot(h1.astype(jnp.bfloat16), w2t,
                 preferred_element_type=jnp.float32) + b2

    # ---- residual + LayerNorm 2 (f32) ----
    rc2 = src1 + ff
    mu2 = jnp.mean(rc2, axis=-1, keepdims=True)
    var2 = jnp.mean((rc2 - mu2) ** 2, axis=-1, keepdims=True)
    out = (rc2 - mu2) * jax.lax.rsqrt(var2 + EPS) * g2 + bt2

    o_ref[...] = out.astype(o_ref.dtype)


def encoder_layer(src, src_mask, params):
    """src: (S, N, E) float32 (PyTorch MultiheadAttention layout).
       src_mask: (S, S) additive float mask.  Returns (S, N, E)."""
    S, N, E = src.shape
    R = S * N
    # Native row ordering (s, n) -> no wrapper transposes.
    x2d = src.reshape(R, E)

    (in_w, in_b, out_w, out_b, w1, b1, w2, b2, g1, bt1, g2, bt2) = params

    # Block-diagonal additive attention mask for the (s, n)-ordered rows:
    # rows attend only within their own batch element, with src_mask applied.
    r = jnp.arange(R)
    s_idx = r // N
    n_idx = r % N
    mask_full = jnp.where(
        n_idx[:, None] == n_idx[None, :],
        src_mask[s_idx[:, None], s_idx[None, :]],
        NEG,
    ).astype(jnp.float32)

    # Pre-transpose / pre-cast / pack weights at trace time (free, outside kernel).
    in_wt = in_w.T.astype(jnp.bfloat16)                                   # (E, 3E)
    w_stack = jnp.concatenate([out_w.T, w1.T, w2.T],
                              axis=0).astype(jnp.bfloat16)                # (3E, E)
    vecs = jnp.concatenate(
        [out_b, b1, b2, g1, bt1, g2, bt2, jnp.zeros((1, E), jnp.float32)],
        axis=0)                                                           # (8, E)

    out2d = pl.pallas_call(
        encoder_layer_kernel,
        out_shape=jax.ShapeDtypeStruct((R, E), src.dtype),
        grid_spec=pltpu.PrefetchScalarGridSpec(
            num_scalar_prefetch=0,
            grid=(1,),                                     # single invocation
            in_specs=[
                pl.BlockSpec((R, E), lambda i: (0, 0)),        # activations
                pl.BlockSpec((R, R), lambda i: (0, 0)),        # block-diag mask
                pl.BlockSpec((E, 3 * E), lambda i: (0, 0)),    # in_proj.T (bf16)
                pl.BlockSpec((3 * E, E), lambda i: (0, 0)),    # stacked weights (bf16)
                pl.BlockSpec((1, 3 * E), lambda i: (0, 0)),    # in_proj bias
                pl.BlockSpec((8, E), lambda i: (0, 0)),        # packed vectors
            ],
            out_specs=pl.BlockSpec((R, E), lambda i: (0, 0)),
        ),
        compiler_params=pltpu.CompilerParams(
            dimension_semantics=("arbitrary",)),
    )(x2d, mask_full, in_wt, w_stack, in_b.reshape(1, 3 * E), vecs)

    return out2d.reshape(S, N, E)


def reference_encoder_layer(src, src_mask, params):
    """Pure-JAX f32 reference matching PyTorch eval-mode semantics."""
    (in_w, in_b, out_w, out_b, w1, b1, w2, b2, g1, bt1, g2, bt2) = params
    S, N, E = src.shape
    x = jnp.transpose(src, (1, 0, 2))             # (N, S, E)
    qkv = x @ in_w.T + in_b[0]
    q, k, v = qkv[..., :E], qkv[..., E:2 * E], qkv[..., 2 * E:]

    def heads(t):  # (N, S, E) -> (N, H, S, Dh)
        return t.reshape(N, S, HEADS, HEAD_DIM).transpose(0, 2, 1, 3)

    qh, kh, vh = heads(q), heads(k), heads(v)
    s = jnp.einsum('nhqd,nhkd->nhqk', qh, kh) / (HEAD_DIM ** 0.5) + src_mask
    p = jax.nn.softmax(s, axis=-1)
    a = jnp.einsum('nhqk,nhkd->nhqd', p, vh).transpose(0, 2, 1, 3).reshape(N, S, E)
    a = a @ out_w.T + out_b[0]

    def ln(t, g, b):
        mu = jnp.mean(t, -1, keepdims=True)
        var = jnp.mean((t - mu) ** 2, -1, keepdims=True)
        return (t - mu) * jax.lax.rsqrt(var + EPS) * g[0] + b[0]

    src1 = ln(x + a, g1, bt1)
    ff = jnp.maximum(src1 @ w1.T + b1[0], 0.0) @ w2.T + b2[0]
    out = ln(src1 + ff, g2, bt2)
    return jnp.transpose(out, (1, 0, 2))


def make_params(key, hidden):
    ks = jax.random.split(key, 8)
    E = hidden
    in_w = jax.random.normal(ks[0], (3 * E, E), jnp.float32) * 0.1
    in_b = jax.random.normal(ks[1], (1, 3 * E), jnp.float32) * 0.01
    out_w = jax.random.normal(ks[2], (E, E), jnp.float32) * 0.1
    out_b = jax.random.normal(ks[3], (1, E), jnp.float32) * 0.01
    w1 = jax.random.normal(ks[4], (E, E), jnp.float32) * 0.1
    b1 = jax.random.normal(ks[5], (1, E), jnp.float32) * 0.01
    w2 = jax.random.normal(ks[6], (E, E), jnp.float32) * 0.1
    b2 = jax.random.normal(ks[7], (1, E), jnp.float32) * 0.01
    g1 = jnp.ones((1, E), jnp.float32)
    bt1 = jnp.zeros((1, E), jnp.float32)
    g2 = jnp.ones((1, E), jnp.float32)
    bt2 = jnp.zeros((1, E), jnp.float32)
    return (in_w, in_b, out_w, out_b, w1, b1, w2, b2, g1, bt1, g2, bt2)


if __name__ == "__main__":
    key = jax.random.PRNGKey(0)
    k_src, k_par = jax.random.split(key)

    src = jax.random.normal(k_src, (SEQ, BATCH, HIDDEN), jnp.float32)  # (S, N, E)
    # additive float attention mask (upper-triangular positions disallowed)
    src_mask = jnp.where(
        jnp.triu(jnp.ones((SEQ, SEQ), jnp.bool_), k=1), NEG, 0.0
    ).astype(jnp.float32)
    params = make_params(k_par, HIDDEN)

    out = encoder_layer(src, src_mask, params)
    out = jax.block_until_ready(out)

    ref = reference_encoder_layer(src, src_mask, params)
    assert out.shape == (SEQ, BATCH, HIDDEN)
    assert jnp.all(jnp.isfinite(out))
    # Tolerance accounts for bf16 MXU operands (f32 accumulate) per the perf
    # feedback; measured deviation is well inside this budget.
    assert jnp.allclose(out, ref, atol=2e-2, rtol=2e-2)
    print("KERNEL_OK")
</pallas_src>

<mosaic_0001>
module attributes {stable_mosaic.version = 11 : i64} {
  func.func @encoder_layer_kernel(%arg0: i32, %arg1: memref<16x32xf32, #tpu.memory_space<vmem>>, %arg2: memref<16x16xf32, #tpu.memory_space<vmem>>, %arg3: memref<32x96xbf16, #tpu.memory_space<vmem>>, %arg4: memref<96x32xbf16, #tpu.memory_space<vmem>>, %arg5: memref<1x96xf32, #tpu.memory_space<vmem>>, %arg6: memref<8x32xf32, #tpu.memory_space<vmem>>, %arg7: memref<16x32xf32, #tpu.memory_space<vmem>>) attributes {dimension_semantics = [#tpu.dimension_semantics<arbitrary>], iteration_bounds = array<i64: 1>, scalar_prefetch = 0 : i64, scratch_operands = 0 : i64, tpu.core_type = #tpu.core_type<tc>, window_params = [{pipeline_mode = #tpu.pipeline_mode<synchronous>, transform_indices = @transform_0, window_bounds = array<i64: 16, 32>}, {pipeline_mode = #tpu.pipeline_mode<synchronous>, transform_indices = @transform_1, window_bounds = array<i64: 16, 16>}, {pipeline_mode = #tpu.pipeline_mode<synchronous>, transform_indices = @transform_2, window_bounds = array<i64: 32, 96>}, {pipeline_mode = #tpu.pipeline_mode<synchronous>, transform_indices = @transform_3, window_bounds = array<i64: 96, 32>}, {pipeline_mode = #tpu.pipeline_mode<synchronous>, transform_indices = @transform_4, window_bounds = array<i64: 1, 96>}, {pipeline_mode = #tpu.pipeline_mode<synchronous>, transform_indices = @transform_5, window_bounds = array<i64: 8, 32>}, {pipeline_mode = #tpu.pipeline_mode<synchronous>, transform_indices = @transform_6, window_bounds = array<i64: 16, 32>}]} {
    %c0 = arith.constant 0 : index
    %c0_0 = arith.constant 0 : index
    %0 = vector.load %arg1[%c0, %c0_0] : memref<16x32xf32, #tpu.memory_space<vmem>>, vector<16x32xf32>
    %c0_1 = arith.constant 0 : index
    %c0_2 = arith.constant 0 : index
    %1 = vector.load %arg2[%c0_1, %c0_2] : memref<16x16xf32, #tpu.memory_space<vmem>>, vector<16x16xf32>
    %c0_3 = arith.constant 0 : index
    %c0_4 = arith.constant 0 : index
    %2 = vector.load %arg3[%c0_3, %c0_4] : memref<32x96xbf16, #tpu.memory_space<vmem>>, vector<32x96xbf16>
    %c0_5 = arith.constant 0 : index
    %c0_6 = arith.constant 0 : index
    %3 = vector.load %arg4[%c0_5, %c0_6] : memref<96x32xbf16, #tpu.memory_space<vmem>>, vector<96x32xbf16>
    %4 = vector.extract_strided_slice %3 {offsets = [0, 0], sizes = [32, 32], strides = [1, 1]} : vector<96x32xbf16> to vector<32x32xbf16>
    %5 = vector.extract_strided_slice %3 {offsets = [32, 0], sizes = [32, 32], strides = [1, 1]} : vector<96x32xbf16> to vector<32x32xbf16>
    %6 = vector.extract_strided_slice %3 {offsets = [64, 0], sizes = [32, 32], strides = [1, 1]} : vector<96x32xbf16> to vector<32x32xbf16>
    %c0_7 = arith.constant 0 : index
    %c0_8 = arith.constant 0 : index
    %7 = vector.load %arg5[%c0_7, %c0_8] : memref<1x96xf32, #tpu.memory_space<vmem>>, vector<1x96xf32>
    %c0_9 = arith.constant 0 : index
    %c0_10 = arith.constant 0 : index
    %8 = vector.load %arg6[%c0_9, %c0_10] : memref<8x32xf32, #tpu.memory_space<vmem>>, vector<8x32xf32>
    %9 = vector.extract_strided_slice %8 {offsets = [0, 0], sizes = [1, 32], strides = [1, 1]} : vector<8x32xf32> to vector<1x32xf32>
    %10 = vector.extract_strided_slice %8 {offsets = [1, 0], sizes = [1, 32], strides = [1, 1]} : vector<8x32xf32> to vector<1x32xf32>
    %11 = vector.extract_strided_slice %8 {offsets = [2, 0], sizes = [1, 32], strides = [1, 1]} : vector<8x32xf32> to vector<1x32xf32>
    %12 = vector.extract_strided_slice %8 {offsets = [3, 0], sizes = [1, 32], strides = [1, 1]} : vector<8x32xf32> to vector<1x32xf32>
    %13 = vector.extract_strided_slice %8 {offsets = [4, 0], sizes = [1, 32], strides = [1, 1]} : vector<8x32xf32> to vector<1x32xf32>
    %14 = vector.extract_strided_slice %8 {offsets = [5, 0], sizes = [1, 32], strides = [1, 1]} : vector<8x32xf32> to vector<1x32xf32>
    %15 = vector.extract_strided_slice %8 {offsets = [6, 0], sizes = [1, 32], strides = [1, 1]} : vector<8x32xf32> to vector<1x32xf32>
    %16 = arith.truncf %0 : vector<16x32xf32> to vector<16x32xbf16>
    %cst = arith.constant dense<0.000000e+00> : vector<16x96xf32>
    %17 = tpu.matmul %16, %2, %cst {dimension_numbers = #tpu.dot_dimension_numbers<[1], [0], [0], [1], [0, 0, 1, 1], [], []>} : vector<16x32xbf16>, vector<32x96xbf16>, vector<16x96xf32> -> vector<16x96xf32>
    %18 = vector.broadcast %7 : vector<1x96xf32> to vector<16x96xf32>
    %19 = arith.addf %17, %18 : vector<16x96xf32>
    %20 = arith.truncf %19 : vector<16x96xf32> to vector<16x96xbf16>
    %21 = vector.extract_strided_slice %20 {offsets = [0, 0], sizes = [16, 8], strides = [1, 1]} : vector<16x96xbf16> to vector<16x8xbf16>
    %22 = vector.extract_strided_slice %20 {offsets = [0, 32], sizes = [16, 8], strides = [1, 1]} : vector<16x96xbf16> to vector<16x8xbf16>
    %23 = vector.extract_strided_slice %20 {offsets = [0, 64], sizes = [16, 8], strides = [1, 1]} : vector<16x96xbf16> to vector<16x8xbf16>
    %cst_11 = arith.constant dense<0.000000e+00> : vector<16x16xf32>
    %24 = tpu.matmul %21, %22, %cst_11 {dimension_numbers = #tpu.dot_dimension_numbers<[1], [1], [0], [0], [0, 0, 1, 0], [], []>} : vector<16x8xbf16>, vector<16x8xbf16>, vector<16x16xf32> -> vector<16x16xf32>
    %cst_12 = arith.constant 0.353553385 : f32
    %25 = vector.broadcast %cst_12 : f32 to vector<16x16xf32>
    %26 = arith.mulf %24, %25 : vector<16x16xf32>
    %27 = arith.addf %26, %1 : vector<16x16xf32>
    %cst_13 = arith.constant dense<0xFF800000> : vector<16xf32>
    %28 = vector.multi_reduction <maximumf>, %27, %cst_13 [1] : vector<16x16xf32> to vector<16xf32>
    %29 = vector.shape_cast %28 : vector<16xf32> to vector<16x1xf32>
    %30 = vector.broadcast %29 : vector<16x1xf32> to vector<16x16xf32>
    %31 = arith.subf %27, %30 : vector<16x16xf32>
    %32 = math.exp %31 : vector<16x16xf32>
    %cst_14 = arith.constant dense<0.000000e+00> : vector<16xf32>
    %33 = vector.multi_reduction <add>, %32, %cst_14 [1] : vector<16x16xf32> to vector<16xf32>
    %34 = vector.shape_cast %33 : vector<16xf32> to vector<16x1xf32>
    %35 = tpu.reciprocal %34 {approx = true} : vector<16x1xf32> -> vector<16x1xf32>
    %36 = vector.broadcast %35 : vector<16x1xf32> to vector<16x16xf32>
    %37 = arith.mulf %32, %36 : vector<16x16xf32>
    %38 = arith.truncf %37 : vector<16x16xf32> to vector<16x16xbf16>
    %cst_15 = arith.constant dense<0.000000e+00> : vector<16x8xf32>
    %39 = tpu.matmul %38, %23, %cst_15 {dimension_numbers = #tpu.dot_dimension_numbers<[1], [0], [0], [1], [0, 0, 1, 1], [], []>} : vector<16x16xbf16>, vector<16x8xbf16>, vector<16x8xf32> -> vector<16x8xf32>
    %40 = vector.extract_strided_slice %20 {offsets = [0, 8], sizes = [16, 8], strides = [1, 1]} : vector<16x96xbf16> to vector<16x8xbf16>
    %41 = vector.extract_strided_slice %20 {offsets = [0, 40], sizes = [16, 8], strides = [1, 1]} : vector<16x96xbf16> to vector<16x8xbf16>
    %42 = vector.extract_strided_slice %20 {offsets = [0, 72], sizes = [16, 8], strides = [1, 1]} : vector<16x96xbf16> to vector<16x8xbf16>
    %cst_16 = arith.constant dense<0.000000e+00> : vector<16x16xf32>
    %43 = tpu.matmul %40, %41, %cst_16 {dimension_numbers = #tpu.dot_dimension_numbers<[1], [1], [0], [0], [0, 0, 1, 0], [], []>} : vector<16x8xbf16>, vector<16x8xbf16>, vector<16x16xf32> -> vector<16x16xf32>
    %cst_17 = arith.constant 0.353553385 : f32
    %44 = vector.broadcast %cst_17 : f32 to vector<16x16xf32>
    %45 = arith.mulf %43, %44 : vector<16x16xf32>
    %46 = arith.addf %45, %1 : vector<16x16xf32>
    %cst_18 = arith.constant dense<0xFF800000> : vector<16xf32>
    %47 = vector.multi_reduction <maximumf>, %46, %cst_18 [1] : vector<16x16xf32> to vector<16xf32>
    %48 = vector.shape_cast %47 : vector<16xf32> to vector<16x1xf32>
    %49 = vector.broadcast %48 : vector<16x1xf32> to vector<16x16xf32>
    %50 = arith.subf %46, %49 : vector<16x16xf32>
    %51 = math.exp %50 : vector<16x16xf32>
    %cst_19 = arith.constant dense<0.000000e+00> : vector<16xf32>
    %52 = vector.multi_reduction <add>, %51, %cst_19 [1] : vector<16x16xf32> to vector<16xf32>
    %53 = vector.shape_cast %52 : vector<16xf32> to vector<16x1xf32>
    %54 = tpu.reciprocal %53 {approx = true} : vector<16x1xf32> -> vector<16x1xf32>
    %55 = vector.broadcast %54 : vector<16x1xf32> to vector<16x16xf32>
    %56 = arith.mulf %51, %55 : vector<16x16xf32>
    %57 = arith.truncf %56 : vector<16x16xf32> to vector<16x16xbf16>
    %cst_20 = arith.constant dense<0.000000e+00> : vector<16x8xf32>
    %58 = tpu.matmul %57, %42, %cst_20 {dimension_numbers = #tpu.dot_dimension_numbers<[1], [0], [0], [1], [0, 0, 1, 1], [], []>} : vector<16x16xbf16>, vector<16x8xbf16>, vector<16x8xf32> -> vector<16x8xf32>
    %59 = vector.extract_strided_slice %20 {offsets = [0, 16], sizes = [16, 8], strides = [1, 1]} : vector<16x96xbf16> to vector<16x8xbf16>
    %60 = vector.extract_strided_slice %20 {offsets = [0, 48], sizes = [16, 8], strides = [1, 1]} : vector<16x96xbf16> to vector<16x8xbf16>
    %61 = vector.extract_strided_slice %20 {offsets = [0, 80], sizes = [16, 8], strides = [1, 1]} : vector<16x96xbf16> to vector<16x8xbf16>
    %cst_21 = arith.constant dense<0.000000e+00> : vector<16x16xf32>
    %62 = tpu.matmul %59, %60, %cst_21 {dimension_numbers = #tpu.dot_dimension_numbers<[1], [1], [0], [0], [0, 0, 1, 0], [], []>} : vector<16x8xbf16>, vector<16x8xbf16>, vector<16x16xf32> -> vector<16x16xf32>
    %cst_22 = arith.constant 0.353553385 : f32
    %63 = vector.broadcast %cst_22 : f32 to vector<16x16xf32>
    %64 = arith.mulf %62, %63 : vector<16x16xf32>
    %65 = arith.addf %64, %1 : vector<16x16xf32>
    %cst_23 = arith.constant dense<0xFF800000> : vector<16xf32>
    %66 = vector.multi_reduction <maximumf>, %65, %cst_23 [1] : vector<16x16xf32> to vector<16xf32>
    %67 = vector.shape_cast %66 : vector<16xf32> to vector<16x1xf32>
    %68 = vector.broadcast %67 : vector<16x1xf32> to vector<16x16xf32>
    %69 = arith.subf %65, %68 : vector<16x16xf32>
    %70 = math.exp %69 : vector<16x16xf32>
    %cst_24 = arith.constant dense<0.000000e+00> : vector<16xf32>
    %71 = vector.multi_reduction <add>, %70, %cst_24 [1] : vector<16x16xf32> to vector<16xf32>
    %72 = vector.shape_cast %71 : vector<16xf32> to vector<16x1xf32>
    %73 = tpu.reciprocal %72 {approx = true} : vector<16x1xf32> -> vector<16x1xf32>
    %74 = vector.broadcast %73 : vector<16x1xf32> to vector<16x16xf32>
    %75 = arith.mulf %70, %74 : vector<16x16xf32>
    %76 = arith.truncf %75 : vector<16x16xf32> to vector<16x16xbf16>
    %cst_25 = arith.constant dense<0.000000e+00> : vector<16x8xf32>
    %77 = tpu.matmul %76, %61, %cst_25 {dimension_numbers = #tpu.dot_dimension_numbers<[1], [0], [0], [1], [0, 0, 1, 1], [], []>} : vector<16x16xbf16>, vector<16x8xbf16>, vector<16x8xf32> -> vector<16x8xf32>
    %78 = vector.extract_strided_slice %20 {offsets = [0, 24], sizes = [16, 8], strides = [1, 1]} : vector<16x96xbf16> to vector<16x8xbf16>
    %79 = vector.extract_strided_slice %20 {offsets = [0, 56], sizes = [16, 8], strides = [1, 1]} : vector<16x96xbf16> to vector<16x8xbf16>
    %80 = vector.extract_strided_slice %20 {offsets = [0, 88], sizes = [16, 8], strides = [1, 1]} : vector<16x96xbf16> to vector<16x8xbf16>
    %cst_26 = arith.constant dense<0.000000e+00> : vector<16x16xf32>
    %81 = tpu.matmul %78, %79, %cst_26 {dimension_numbers = #tpu.dot_dimension_numbers<[1], [1], [0], [0], [0, 0, 1, 0], [], []>} : vector<16x8xbf16>, vector<16x8xbf16>, vector<16x16xf32> -> vector<16x16xf32>
    %cst_27 = arith.constant 0.353553385 : f32
    %82 = vector.broadcast %cst_27 : f32 to vector<16x16xf32>
    %83 = arith.mulf %81, %82 : vector<16x16xf32>
    %84 = arith.addf %83, %1 : vector<16x16xf32>
    %cst_28 = arith.constant dense<0xFF800000> : vector<16xf32>
    %85 = vector.multi_reduction <maximumf>, %84, %cst_28 [1] : vector<16x16xf32> to vector<16xf32>
    %86 = vector.shape_cast %85 : vector<16xf32> to vector<16x1xf32>
    %87 = vector.broadcast %86 : vector<16x1xf32> to vector<16x16xf32>
    %88 = arith.subf %84, %87 : vector<16x16xf32>
    %89 = math.exp %88 : vector<16x16xf32>
    %cst_29 = arith.constant dense<0.000000e+00> : vector<16xf32>
    %90 = vector.multi_reduction <add>, %89, %cst_29 [1] : vector<16x16xf32> to vector<16xf32>
    %91 = vector.shape_cast %90 : vector<16xf32> to vector<16x1xf32>
    %92 = tpu.reciprocal %91 {approx = true} : vector<16x1xf32> -> vector<16x1xf32>
    %93 = vector.broadcast %92 : vector<16x1xf32> to vector<16x16xf32>
    %94 = arith.mulf %89, %93 : vector<16x16xf32>
    %95 = arith.truncf %94 : vector<16x16xf32> to vector<16x16xbf16>
    %cst_30 = arith.constant dense<0.000000e+00> : vector<16x8xf32>
    %96 = tpu.matmul %95, %80, %cst_30 {dimension_numbers = #tpu.dot_dimension_numbers<[1], [0], [0], [1], [0, 0, 1, 1], [], []>} : vector<16x16xbf16>, vector<16x8xbf16>, vector<16x8xf32> -> vector<16x8xf32>
    %97 = tpu.concatenate %39, %58, %77, %96 in 1 : vector<16x8xf32>, vector<16x8xf32>, vector<16x8xf32>, vector<16x8xf32> -> vector<16x32xf32>
    %98 = arith.truncf %97 : vector<16x32xf32> to vector<16x32xbf16>
    %cst_31 = arith.constant dense<0.000000e+00> : vector<16x32xf32>
    %99 = tpu.matmul %98, %4, %cst_31 {dimension_numbers = #tpu.dot_dimension_numbers<[1], [0], [0], [1], [0, 0, 1, 1], [], []>} : vector<16x32xbf16>, vector<32x32xbf16>, vector<16x32xf32> -> vector<16x32xf32>
    %100 = vector.broadcast %9 : vector<1x32xf32> to vector<16x32xf32>
    %101 = arith.addf %99, %100 : vector<16x32xf32>
    %102 = arith.addf %0, %101 : vector<16x32xf32>
    %cst_32 = arith.constant dense<0.000000e+00> : vector<16xf32>
    %103 = vector.multi_reduction <add>, %102, %cst_32 [1] : vector<16x32xf32> to vector<16xf32>
    %104 = vector.shape_cast %103 : vector<16xf32> to vector<16x1xf32>
    %cst_33 = arith.constant 3.200000e+01 : f32
    %105 = vector.broadcast %cst_33 : f32 to vector<16x1xf32>
    %106 = arith.divf %104, %105 : vector<16x1xf32>
    %107 = vector.broadcast %106 : vector<16x1xf32> to vector<16x32xf32>
    %108 = arith.subf %102, %107 : vector<16x32xf32>
    %109 = arith.mulf %108, %108 : vector<16x32xf32>
    %cst_34 = arith.constant dense<0.000000e+00> : vector<16xf32>
    %110 = vector.multi_reduction <add>, %109, %cst_34 [1] : vector<16x32xf32> to vector<16xf32>
    %111 = vector.shape_cast %110 : vector<16xf32> to vector<16x1xf32>
    %cst_35 = arith.constant 3.200000e+01 : f32
    %112 = vector.broadcast %cst_35 : f32 to vector<16x1xf32>
    %113 = arith.divf %111, %112 : vector<16x1xf32>
    %114 = vector.broadcast %106 : vector<16x1xf32> to vector<16x32xf32>
    %115 = arith.subf %102, %114 : vector<16x32xf32>
    %cst_36 = arith.constant 9.99999974E-6 : f32
    %116 = vector.broadcast %cst_36 : f32 to vector<16x1xf32>
    %117 = arith.addf %113, %116 : vector<16x1xf32>
    %118 = math.rsqrt %117 : vector<16x1xf32>
    %119 = vector.broadcast %118 : vector<16x1xf32> to vector<16x32xf32>
    %120 = arith.mulf %115, %119 : vector<16x32xf32>
    %121 = vector.broadcast %12 : vector<1x32xf32> to vector<16x32xf32>
    %122 = arith.mulf %120, %121 : vector<16x32xf32>
    %123 = vector.broadcast %13 : vector<1x32xf32> to vector<16x32xf32>
    %124 = arith.addf %122, %123 : vector<16x32xf32>
    %125 = arith.truncf %124 : vector<16x32xf32> to vector<16x32xbf16>
    %cst_37 = arith.constant dense<0.000000e+00> : vector<16x32xf32>
    %126 = tpu.matmul %125, %5, %cst_37 {dimension_numbers = #tpu.dot_dimension_numbers<[1], [0], [0], [1], [0, 0, 1, 1], [], []>} : vector<16x32xbf16>, vector<32x32xbf16>, vector<16x32xf32> -> vector<16x32xf32>
    %127 = vector.broadcast %10 : vector<1x32xf32> to vector<16x32xf32>
    %128 = arith.addf %126, %127 : vector<16x32xf32>
    %cst_38 = arith.constant 0.000000e+00 : f32
    %129 = vector.broadcast %cst_38 : f32 to vector<16x32xf32>
    %130 = arith.maximumf %128, %129 : vector<16x32xf32>
    %131 = arith.truncf %130 : vector<16x32xf32> to vector<16x32xbf16>
    %cst_39 = arith.constant dense<0.000000e+00> : vector<16x32xf32>
    %132 = tpu.matmul %131, %6, %cst_39 {dimension_numbers = #tpu.dot_dimension_numbers<[1], [0], [0], [1], [0, 0, 1, 1], [], []>} : vector<16x32xbf16>, vector<32x32xbf16>, vector<16x32xf32> -> vector<16x32xf32>
    %133 = vector.broadcast %11 : vector<1x32xf32> to vector<16x32xf32>
    %134 = arith.addf %132, %133 : vector<16x32xf32>
    %135 = arith.addf %124, %134 : vector<16x32xf32>
    %cst_40 = arith.constant dense<0.000000e+00> : vector<16xf32>
    %136 = vector.multi_reduction <add>, %135, %cst_40 [1] : vector<16x32xf32> to vector<16xf32>
    %137 = vector.shape_cast %136 : vector<16xf32> to vector<16x1xf32>
    %cst_41 = arith.constant 3.200000e+01 : f32
    %138 = vector.broadcast %cst_41 : f32 to vector<16x1xf32>
    %139 = arith.divf %137, %138 : vector<16x1xf32>
    %140 = vector.broadcast %139 : vector<16x1xf32> to vector<16x32xf32>
    %141 = arith.subf %135, %140 : vector<16x32xf32>
    %142 = arith.mulf %141, %141 : vector<16x32xf32>
    %cst_42 = arith.constant dense<0.000000e+00> : vector<16xf32>
    %143 = vector.multi_reduction <add>, %142, %cst_42 [1] : vector<16x32xf32> to vector<16xf32>
    %144 = vector.shape_cast %143 : vector<16xf32> to vector<16x1xf32>
    %cst_43 = arith.constant 3.200000e+01 : f32
    %145 = vector.broadcast %cst_43 : f32 to vector<16x1xf32>
    %146 = arith.divf %144, %145 : vector<16x1xf32>
    %147 = vector.broadcast %139 : vector<16x1xf32> to vector<16x32xf32>
    %148 = arith.subf %135, %147 : vector<16x32xf32>
    %cst_44 = arith.constant 9.99999974E-6 : f32
    %149 = vector.broadcast %cst_44 : f32 to vector<16x1xf32>
    %150 = arith.addf %146, %149 : vector<16x1xf32>
    %151 = math.rsqrt %150 : vector<16x1xf32>
    %152 = vector.broadcast %151 : vector<16x1xf32> to vector<16x32xf32>
    %153 = arith.mulf %148, %152 : vector<16x32xf32>
    %154 = vector.broadcast %14 : vector<1x32xf32> to vector<16x32xf32>
    %155 = arith.mulf %153, %154 : vector<16x32xf32>
    %156 = vector.broadcast %15 : vector<1x32xf32> to vector<16x32xf32>
    %157 = arith.addf %155, %156 : vector<16x32xf32>
    %c0_45 = arith.constant 0 : index
    %c0_46 = arith.constant 0 : index
    %158 = vector.load %arg7[%c0_45, %c0_46] : memref<16x32xf32, #tpu.memory_space<vmem>>, vector<16x32xf32>
    tpu.vector_store %arg7[%c0_45, %c0_46], %157 {strides = array<i32>} : memref<16x32xf32, #tpu.memory_space<vmem>>, vector<16x32xf32>,
    return
  }
  func.func @transform_0(%arg0: i32) -> (i32, i32) {
    %c0_i32 = arith.constant 0 : i32
    %c0_i32_0 = arith.constant 0 : i32
    %c0_i32_1 = arith.constant 0 : i32
    return %c0_i32, %c0_i32_0 : i32, i32
  }
  func.func @transform_1(%arg0: i32) -> (i32, i32) {
    %c0_i32 = arith.constant 0 : i32
    %c0_i32_0 = arith.constant 0 : i32
    %c0_i32_1 = arith.constant 0 : i32
    return %c0_i32, %c0_i32_0 : i32, i32
  }
  func.func @transform_2(%arg0: i32) -> (i32, i32) {
    %c0_i32 = arith.constant 0 : i32
    %c0_i32_0 = arith.constant 0 : i32
    %c0_i32_1 = arith.constant 0 : i32
    return %c0_i32, %c0_i32_0 : i32, i32
  }
  func.func @transform_3(%arg0: i32) -> (i32, i32) {
    %c0_i32 = arith.constant 0 : i32
    %c0_i32_0 = arith.constant 0 : i32
    %c0_i32_1 = arith.constant 0 : i32
    return %c0_i32, %c0_i32_0 : i32, i32
  }
  func.func @transform_4(%arg0: i32) -> (i32, i32) {
    %c0_i32 = arith.constant 0 : i32
    %c0_i32_0 = arith.constant 0 : i32
    %c0_i32_1 = arith.constant 0 : i32
    return %c0_i32, %c0_i32_0 : i32, i32
  }
  func.func @transform_5(%arg0: i32) -> (i32, i32) {
    %c0_i32 = arith.constant 0 : i32
    %c0_i32_0 = arith.constant 0 : i32
    %c0_i32_1 = arith.constant 0 : i32
    return %c0_i32, %c0_i32_0 : i32, i32
  }
  func.func @transform_6(%arg0: i32) -> (i32, i32) {
    %c0_i32 = arith.constant 0 : i32
    %c0_i32_0 = arith.constant 0 : i32
    %c0_i32_1 = arith.constant 0 : i32
    return %c0_i32, %c0_i32_0 : i32, i32
  }
}

</mosaic_0001>

<bundles_post_ra>
// kernel: tpu_custom_call.1
= control target key start
LH: loop header
LB: loop body
LE: loop exit
PB: predicated region body
PF: predicated region fallthrough
CT: control target
= control target key end

     0   :  { %v1162_v1 = vmov 0.0   ;;  %vm1163_vm0 = vmmov 0   ;;  %vm66_vm1 = vcmask 261120   ;;  %s1405_s0 = inlined_call_operand.vmem [shape: f32[16,32], index: 0, kind: input, shape index: {}]   ;;  %s1406_s1 = inlined_call_operand.vmem [shape: f32[16,16], index: 1, kind: input, shape index: {}]   ;;  %s1407_s2 = inlined_call_operand.vmem [shape: bf16[32,96], index: 2, kind: input, shape index: {}]   ;;  %s1408_s3 = inlined_call_operand.vmem [shape: bf16[96,32], index: 3, kind: input, shape index: {}]   ;;  %s1409_s4 = inlined_call_operand.vmem [shape: f32[1,96], index: 4, kind: input, shape index: {}]   ;;  %s1410_s5 = inlined_call_operand.vmem [shape: f32[8,32], index: 5, kind: input, shape index: {}]   ;;  %s1411_s6 = inlined_call_operand.hbm [shape: f32[16,32], index: 6, kind: output, shape index: {}]  }
   0x1   :  { %v1090_v0 = vld [vmem:[%s1407_s2] sm:$0xff]   ;;  %977 = vmatprep.subr.bf16.mxu0 %v1162_v1  ;;  %985 = vmatprep.subr.bf16.mxu1 %v1162_v1  ;;  %v1091_v2 = vld [vmem:[%s1407_s2 + $0x8] sm:$0xff]  }
   0x2   :  { %978 = vmatpush3.bf16.msra.mxu0 %v1090_v0  ;;  %981 = vmatprep.mubr.msk.bf16.mxu0 %vm1163_vm0, %v1162_v1  ;;  %v1228_v3 = vld [vmem:[%s1405_s0] sm:$0xff]  ;;  %v1233_v4 = vld [vmem:[%s1405_s0 + $0x8] sm:$0xff] }
   0x3   :  { %979 = vmatprep.subr.bf16.mxu0 %v1162_v1  ;;  %987 = vmatprep.mubr.msk.bf16.mxu1 %vm1163_vm0, %v1162_v1  ;;  %v47_v5 = vpack.c.bf16 %v1233_v4, %v1228_v3 }
   0x6   :  { %980 = vmatpush3.bf16.msra.mxu0 %v1091_v2 }
   0x7   :  { %991 = vmatprep.subr.bf16.mxu0 %v1162_v1 }
   0x8   :  { %11 = vsyncpa [#allocation3], 0  ;;  %v928_v6 = vld [vmem:[%s1409_s4] ss:$0 sm:$0xff]  ;;  %s1164_s29 = smov 120   ;;  %s1165_s30 = smov 96  }
   0x9   :  { %982 = vmatmul.mubr.msk.bf16.vlgmr.msra.gmra.mrb[0].mxu0 %vm66_vm1, %v47_v5  ;;  %s1166_s7 = smov 80   ;;  %s1167_s8 = smov 88   ;;  %vm115_vm2 = vcmask 64512   ;;  %v27_v26 = vld [vmem:[%s1406_s1] sm:$0xff]  ;;  %vm167_vm3 = vcmask 130048   ;;  %v28_v30 = vld [vmem:[%s1406_s1 + $0x8] sm:$0xff] }
   0xa   :  { %993 = vmatprep.mubr.msk.bf16.mxu0 %vm1163_vm0, %v1162_v1  ;;  %s1168_s4 = smov 72   ;;  %s1169_s9 = smov 112   ;;  %vm641_vm4 = vcmask 195584  }
   0xb   :  { %s1170_s10 = smov 104   ;;  %s1171_s1 = smov 56  }
   0xc   :  { %s1172_s15 = smov 64   ;;  %s1173_s16 = smov 48  }
   0xd   :  { %s1174_s17 = smov 40   ;;  %s1175_s20 = smov 8  }
   0xe   :  { %s1176_s23 = smov 16   ;;  %s1177_s24 = smov 24  }
  0xdc   :  { %v104_v7 = vpop.f32.mrb[0].mxu0 }
  0xdd   :  { %v983_v8 = vpop.f32.mrb[1].mxu0  ;;  %v105_v10 = vadd.f32 %v928_v6, %v104_v7 }
  0xde   :  { %v107_v9 = vpop.f32.mrb[2].mxu0 }
  0xdf   :  { %v108_v11 = vadd.f32 %v928_v6, %v107_v9  ;;  %v984_v12 = vpop.f32.mrb[3].mxu0 }
  0xe1   :  { %v1247_v13 = vpack.c.bf16 %v108_v11, %v105_v10 }
  0xe3   :  { %238 = vrot.lane.b32.xlu1 %v1247_v13, %s1164_s29  ;;  %113 = vrot.lane.b32.xlu0 %v1247_v13, %s1165_s30 }
  0xe7   :  { %365 = vrot.lane.b32.xlu1 %v1247_v13, %s1166_s7  ;;  %240 = vrot.lane.b32.xlu0 %v1247_v13, %s1167_s8 }
  0xeb   :  { %490 = vrot.lane.b32.xlu1 %v1247_v13, %s1168_s4  ;;  %363 = vrot.lane.b32.xlu0 %v1247_v13, %s1169_s9 }
  0xef   :  { %488 = vrot.lane.b32.xlu0 %v1247_v13, %s1170_s10 }
 0x155   :  { %v114_v14 = vpop.permute.xlu0 %113  ;;  %v239_v17 = vpop.permute.xlu1 %238 }
 0x156   :  { %v120_v15 = vsel %vm115_vm2, %v114_v14, 0 }
 0x157   :  { %986 = vmatpush3.bf16.xpose.msra.mxu1 %v120_v15 }
 0x158   :  { %997 = vmatprep.subr.bf16.mxu1 %v1162_v1 }
 0x159   :  { %v241_v16 = vpop.permute.xlu0 %240  ;;  %v366_v19 = vpop.permute.xlu1 %365 }
 0x15a   :  { %v246_v18 = vsel %vm115_vm2, %v241_v16, 0  ;;  %v371_v20 = vsel %vm115_vm2, %v366_v19, 0 }
 0x15d   :  { %v491_v21 = vpop.permute.xlu1 %490  ;;  %v364_v22 = vpop.permute.xlu0 %363 }
 0x15e   :  { %988 = vmatmul.mubr.msk.bf16.vlgmr.msra.gmra.mrb[0].mxu1 %vm115_vm2, %v1247_v13  ;;  %v496_v23 = vsel %vm115_vm2, %v491_v21, 0 }
 0x15f   :  { %998 = vmatpush3.bf16.xpose.msra.mxu1 %v246_v18  ;;  %999 = vmatprep.mubr.msk.bf16.mxu1 %vm1163_vm0, %v1162_v1 }
 0x160   :  { %1009 = vmatprep.subr.bf16.mxu1 %v1162_v1 }
 0x161   :  { %v489_v24 = vpop.permute.xlu0 %488 }
 0x166   :  { %1000 = vmatmul.mubr.msk.bf16.vlgmr.msra.gmra.mrb[4].mxu1 %vm115_vm2, %v239_v17 }
 0x167   :  { %1010 = vmatpush3.bf16.xpose.msra.mxu1 %v371_v20  ;;  %1011 = vmatprep.mubr.msk.bf16.mxu1 %vm1163_vm0, %v1162_v1 }
 0x168   :  { %1021 = vmatprep.subr.bf16.mxu1 %v1162_v1 }
 0x16e   :  { %1012 = vmatmul.mubr.msk.bf16.vlgmr.msra.gmra.mrb[8].mxu1 %vm115_vm2, %v364_v22 }
 0x16f   :  { %1022 = vmatpush3.bf16.xpose.msra.mxu1 %v496_v23  ;;  %1023 = vmatprep.mubr.msk.bf16.mxu1 %vm1163_vm0, %v1162_v1 }
 0x170   :  { %1033 = vmatprep.subr.bf16.mxu1 %v1162_v1 }
 0x176   :  { %1024 = vmatmul.mubr.msk.bf16.vlgmr.msra.gmra.mrb[12].mxu1 %vm115_vm2, %v489_v24 }
 0x177   :  { %1037 = vmatprep.mubr.msk.bf16.mxu1 %vm1163_vm0, %v1162_v1 }
 0x231   :  { %v156_v25 = vpop.f32.mrb[0].mxu1 }
 0x232   :  { %v163_v27 = vmul.f32 0.35355338, %v156_v25  ;;  %v989_v28 = vpop.f32.mrb[1].mxu1 }
 0x233   :  { %v159_v29 = vpop.f32.mrb[2].mxu1 }
 0x234   :  { %v164_v31 = vmul.f32 0.35355338, %v159_v29  ;;  %v990_v32 = vpop.f32.mrb[3].mxu1  ;;  %v165_v33 = vadd.f32 %v163_v27, %v27_v26 }
 0x236   :  { %v168_v34 = vsel %vm167_vm3, %v165_v33, -inf  ;;  %v166_v35 = vadd.f32 %v164_v31, %v28_v30 }
 0x237   :  { %169 = vmax.xlane.f32.xlu1 %v168_v34 }
 0x238   :  { %v171_v36 = vsel %vm167_vm3, %v166_v35, -inf }
 0x239   :  { %172 = vmax.xlane.f32.xlu0 %v171_v36  ;;  %v282_v37 = vpop.f32.mrb[4].mxu1 }
 0x23a   :  { %v289_v38 = vmul.f32 0.35355338, %v282_v37  ;;  %v1001_v39 = vpop.f32.mrb[5].mxu1 }
 0x23b   :  { %v285_v40 = vpop.f32.mrb[6].mxu1 }
 0x23c   :  { %v290_v41 = vmul.f32 0.35355338, %v285_v40  ;;  %v1002_v42 = vpop.f32.mrb[7].mxu1  ;;  %v291_v43 = vadd.f32 %v289_v38, %v27_v26 }
 0x23e   :  { %v293_v44 = vsel %vm167_vm3, %v291_v43, -inf  ;;  %v292_v45 = vadd.f32 %v290_v41, %v28_v30 }
 0x23f   :  { %294 = vmax.xlane.f32.xlu0 %v293_v44 }
 0x240   :  { %v296_v46 = vsel %vm167_vm3, %v292_v45, -inf }
 0x241   :  { %297 = vmax.xlane.f32.xlu1 %v296_v46  ;;  %v407_v47 = vpop.f32.mrb[8].mxu1 }
 0x242   :  { %v414_v48 = vmul.f32 0.35355338, %v407_v47  ;;  %v1013_v49 = vpop.f32.mrb[9].mxu1 }
 0x243   :  { %v410_v50 = vpop.f32.mrb[10].mxu1 }
 0x244   :  { %v415_v51 = vmul.f32 0.35355338, %v410_v50  ;;  %v1014_v52 = vpop.f32.mrb[11].mxu1  ;;  %v416_v53 = vadd.f32 %v414_v48, %v27_v26 }
 0x246   :  { %v418_v54 = vsel %vm167_vm3, %v416_v53, -inf  ;;  %v417_v55 = vadd.f32 %v415_v51, %v28_v30 }
 0x247   :  { %419 = vmax.xlane.f32.xlu0 %v418_v54 }
 0x248   :  { %v421_v56 = vsel %vm167_vm3, %v417_v55, -inf }
 0x249   :  { %422 = vmax.xlane.f32.xlu1 %v421_v56  ;;  %v532_v57 = vpop.f32.mrb[12].mxu1 }
 0x24a   :  { %v539_v58 = vmul.f32 0.35355338, %v532_v57  ;;  %v1025_v59 = vpop.f32.mrb[13].mxu1 }
 0x24b   :  { %v535_v60 = vpop.f32.mrb[14].mxu1 }
 0x24c   :  { %v540_v61 = vmul.f32 0.35355338, %v535_v60  ;;  %v1026_v62 = vpop.f32.mrb[15].mxu1  ;;  %v541_v63 = vadd.f32 %v539_v58, %v27_v26 }
 0x24e   :  { %v543_v0 = vsel %vm167_vm3, %v541_v63, -inf  ;;  %v542_v2 = vadd.f32 %v540_v61, %v28_v30 }
 0x24f   :  { %544 = vmax.xlane.f32.xlu0 %v543_v0 }
 0x250   :  { %v546_v5 = vsel %vm167_vm3, %v542_v2, -inf }
 0x251   :  { %547 = vmax.xlane.f32.xlu1 %v546_v5 }
 0x2c4   :  { %v170_v6 = vpop.xlane.xlu1 %169 }
 0x2c5   :  { %v174_v7 = vsub.f32 %v165_v33, %v170_v6 }
 0x2c6   :  { %v173_v8 = vpop.xlane.xlu0 %172 }
 0x2c7   :  { %v176_v9 = vmul.f32 1.442695, %v174_v7  ;;  %v175_v10 = vsub.f32 %v166_v35, %v173_v8 }
 0x2c9   :  { %1098 = vpow2.f32 %v176_v9  ;;  %v178_v11 = vmul.f32 1.442695, %v175_v10 }
 0x2cb   :  { %1100 = vpow2.f32 %v178_v11 }
 0x2cc   :  { %v295_v12 = vpop.xlane.xlu0 %294 }
 0x2cd   :  { %v299_v14 = vsub.f32 %v291_v43, %v295_v12 }
 0x2ce   :  { %v298_v22 = vpop.xlane.xlu1 %297 }
 0x2cf   :  { %v301_v15 = vmul.f32 1.442695, %v299_v14  ;;  %v300_v23 = vsub.f32 %v292_v45, %v298_v22 }
 0x2d1   :  { %1102 = vpow2.f32 %v301_v15  ;;  %v303_v26 = vmul.f32 1.442695, %v300_v23 }
 0x2d3   :  { %v1099_v16 = vpop.eup %1098  ;;  %1104 = vpow2.f32 %v303_v26 }
 0x2d4   :  { %v180_v17 = vsel %vm167_vm3, %v1099_v16, 0.0  ;;  %v420_v25 = vpop.xlane.xlu0 %419 }
 0x2d5   :  { %v1101_v18 = vpop.eup %1100  ;;  %181 = vadd.xlane.f32.xlu0 %v180_v17  ;;  %v424_v29 = vsub.f32 %v416_v53, %v420_v25  ;;  %v1092_v25 = vld [vmem:[%s1408_s3] sm:$0xff]  }
 0x2d6   :  { %v183_v19 = vsel %vm167_vm3, %v1101_v18, 0.0  ;;  %v423_v24 = vpop.xlane.xlu1 %422  ;;  %1034 = vmatpush3.bf16.msra.mxu1 %v1092_v25 }
 0x2d7   :  { %184 = vadd.xlane.f32.xlu1 %v183_v19  ;;  %v425_v27 = vsub.f32 %v417_v55, %v423_v24  ;;  %v426_v33 = vmul.f32 1.442695, %v424_v29  ;;  %1035 = vmatprep.subr.bf16.mxu1 %v1162_v1 }
 0x2d9   :  { %v428_v31 = vmul.f32 1.442695, %v425_v27 }
 0x2db   :  { %v1293_v20 = vpop.eup %1102  ;;  %1106 = vpow2.f32 %v428_v31 }
 0x2dc   :  { %v305_v21 = vsel %vm167_vm3, %v1293_v20, 0.0  ;;  %v545_v30 = vpop.xlane.xlu0 %544  ;;  %1108 = vpow2.f32 %v426_v33 }
 0x2dd   :  { %306 = vadd.xlane.f32.xlu0 %v305_v21  ;;  %v549_v34 = vsub.f32 %v541_v63, %v545_v30  ;;  %v1105_v37 = vpop.eup %1104  ;;  %v1093_v30 = vld [vmem:[%s1408_s3 + $0x8] sm:$0xff]  }
 0x2de   :  { %v548_v28 = vpop.xlane.xlu1 %547  ;;  %v308_v38 = vsel %vm167_vm3, %v1105_v37, 0.0  ;;  %1036 = vmatpush3.bf16.msra.mxu1 %v1093_v30 }
 0x2df   :  { %v550_v32 = vsub.f32 %v542_v2, %v548_v28  ;;  %v551_v36 = vmul.f32 1.442695, %v549_v34  ;;  %1049 = vmatprep.subr.bf16.mxu1 %v1162_v1 }
 0x2e1   :  { %v553_v35 = vmul.f32 1.442695, %v550_v32 }
 0x2e3   :  { %1110 = vpow2.f32 %v553_v35 }
 0x2e4   :  { %1112 = vpow2.f32 %v551_v36 }
 0x2e5   :  { %v1107_v39 = vpop.eup %1106 }
 0x2e6   :  { %v1109_v40 = vpop.eup %1108  ;;  %v433_v41 = vsel %vm167_vm3, %v1107_v39, 0.0 }
 0x2e7   :  { %v430_v43 = vsel %vm167_vm3, %v1109_v40, 0.0 }
 0x2e8   :  { %316 = vrot.lane.b32.xlu1 %v1247_v13, %s1171_s1 }
 0x2ed   :  { %v1301_v42 = vpop.eup %1110 }
 0x2ee   :  { %v1113_v44 = vpop.eup %1112  ;;  %v558_v45 = vsel %vm167_vm3, %v1301_v42, 0.0 }
 0x2ef   :  { %v555_v46 = vsel %vm167_vm3, %v1113_v44, 0.0 }
 0x2f3   :  { %191 = vrot.lane.b32.xlu0 %v1247_v13, %s1172_s15 }
 0x30c   :  { %309 = vadd.xlane.f32.xlu1 %v308_v38 }
 0x310   :  { %434 = vadd.xlane.f32.xlu1 %v433_v41 }
 0x312   :  { %431 = vadd.xlane.f32.xlu0 %v430_v43 }
 0x314   :  { %559 = vadd.xlane.f32.xlu1 %v558_v45 }
 0x316   :  { %556 = vadd.xlane.f32.xlu0 %v555_v46 }
 0x325   :  { %441 = vrot.lane.b32.xlu1 %v1247_v13, %s1173_s16 }
 0x32c   :  { %566 = vrot.lane.b32.xlu0 %v1247_v13, %s1174_s17 }
 0x362   :  { %v182_v47 = vpop.xlane.xlu0 %181 }
 0x363   :  { %1114 = vrcp.f32 %v182_v47 }
 0x364   :  { %v185_v48 = vpop.xlane.xlu1 %184 }
 0x365   :  { %1116 = vrcp.f32 %v185_v48 }
 0x368   :  { %v317_v56 = vpop.permute.xlu1 %316 }
 0x36a   :  { %v307_v49 = vpop.xlane.xlu0 %306 }
 0x36b   :  { %1118 = vrcp.f32 %v307_v49 }
 0x36d   :  { %v1115_v50 = vpop.eup %1114 }
 0x36e   :  { %v192_v51 = vpop.permute.xlu0 %191  ;;  %v188_v53 = vmul.f32 %v1115_v50, %v1099_v16 }
 0x36f   :  { %v1117_v52 = vpop.eup %1116  ;;  %992 = vmatpush3.bf16.msra.mxu0 %v192_v51 }
 0x370   :  { %v189_v54 = vmul.f32 %v1117_v52, %v1101_v18  ;;  %1003 = vmatprep.subr.bf16.mxu0 %v1162_v1 }
 0x372   :  { %v190_v55 = vpack.c.bf16 %v189_v54, %v188_v53 }
 0x374   :  { %994 = vmatmul.mubr.msk.bf16.vlgmr.msra.gmra.mrb[4].mxu0 %vm167_vm3, %v190_v55  ;;  %v645_v55 = vlaneseq }
 0x375   :  { %1004 = vmatpush3.bf16.msra.mxu0 %v317_v56  ;;  %1005 = vmatprep.mubr.msk.bf16.mxu0 %vm1163_vm0, %v1162_v1  ;;  %v1119_v59 = vpop.eup %1118 }
 0x376   :  { %1015 = vmatprep.subr.bf16.mxu0 %v1162_v1  ;;  %v313_v63 = vmul.f32 %v1119_v59, %v1293_v20  ;;  %v1343_v56 = vshrl.u32 %v645_v55, 7 }
 0x378   :  { %v736_v25 = vsub.s32 3, %v1343_v56 }
 0x399   :  { %v310_v13 = vpop.xlane.xlu1 %309 }
 0x39a   :  { %1120 = vrcp.f32 %v310_v13  ;;  %v647_v13 = vsub.s32 0, %v1343_v56 }
 0x39d   :  { %v435_v57 = vpop.xlane.xlu1 %434 }
 0x39e   :  { %1122 = vrcp.f32 %v435_v57  ;;  %v1349_v57 = vld [vmem:[%s1410_s5] sm:$0xff] }
 0x39f   :  { %v432_v58 = vpop.xlane.xlu0 %431 }
 0x3a0   :  { %1124 = vrcp.f32 %v432_v58  ;;  %v648_v58 = vrot.slane %v1349_v57, %v647_v13 }
 0x3a1   :  { %v560_v60 = vpop.xlane.xlu1 %559 }
 0x3a3   :  { %v557_v61 = vpop.xlane.xlu0 %556 }
 0x3a4   :  { %v1121_v62 = vpop.eup %1120  ;;  %1126 = vrcp.f32 %v557_v61 }
 0x3a5   :  { %v314_v0 = vmul.f32 %v1121_v62, %v1105_v37  ;;  %1128 = vrcp.f32 %v560_v60  ;;  %v442_v6 = vpop.permute.xlu1 %441 }
 0x3a7   :  { %v315_v2 = vpack.c.bf16 %v314_v0, %v313_v63  ;;  %v567_v12 = vpop.permute.xlu0 %566 }
 0x3a8   :  { %v1123_v5 = vpop.eup %1122 }
 0x3a9   :  { %1006 = vmatmul.mubr.msk.bf16.vlgmr.msra.gmra.mrb[8].mxu0 %vm167_vm3, %v315_v2  ;;  %v439_v9 = vmul.f32 %v1123_v5, %v1107_v39 }
 0x3aa   :  { %v1125_v7 = vpop.eup %1124  ;;  %1016 = vmatpush3.bf16.msra.mxu0 %v442_v6  ;;  %1017 = vmatprep.mubr.msk.bf16.mxu0 %vm1163_vm0, %v1162_v1 }
 0x3ab   :  { %v438_v8 = vmul.f32 %v1125_v7, %v1109_v40  ;;  %1027 = vmatprep.subr.bf16.mxu0 %v1162_v1 }
 0x3ad   :  { %v440_v10 = vpack.c.bf16 %v439_v9, %v438_v8 }
 0x3ae   :  { %v1127_v11 = vpop.eup %1126 }
 0x3af   :  { %v1129_v14 = vpop.eup %1128  ;;  %v563_v15 = vmul.f32 %v1127_v11, %v1113_v44 }
 0x3b0   :  { %v564_v16 = vmul.f32 %v1129_v14, %v1301_v42 }
 0x3b1   :  { %1018 = vmatmul.mubr.msk.bf16.vlgmr.msra.gmra.mrb[12].mxu0 %vm167_vm3, %v440_v10 }
 0x3b2   :  { %1028 = vmatpush3.bf16.msra.mxu0 %v567_v12  ;;  %1029 = vmatprep.mubr.msk.bf16.mxu0 %vm1163_vm0, %v1162_v1  ;;  %v565_v17 = vpack.c.bf16 %v564_v16, %v563_v15 }
 0x3b3   :  { %1041 = vmatprep.subr.bf16.mxu0 %v1162_v1 }
 0x3b9   :  { %1030 = vmatmul.mubr.msk.bf16.vlgmr.msra.gmra.mrb[16].mxu0 %vm167_vm3, %v565_v17 }
 0x3ba   :  { %1045 = vmatprep.mubr.msk.bf16.mxu0 %vm1163_vm0, %v1162_v1 }
 0x447   :  { %v231_v18 = vpop.f32.mrb[4].mxu0 }
 0x448   :  { %v995_v19 = vpop.f32.mrb[5].mxu0 }
 0x449   :  { %v234_v20 = vpop.f32.mrb[6].mxu0 }
 0x44a   :  { %v996_v21 = vpop.f32.mrb[7].mxu0 }
 0x47c   :  { %v356_v22 = vpop.f32.mrb[8].mxu0 }
 0x47d   :  { %v1007_v23 = vpop.f32.mrb[9].mxu0 }
 0x47e   :  { %v359_v24 = vpop.f32.mrb[10].mxu0 }
 0x47f   :  { %v1075_v26 = vpack.i.bf16 %v359_v24, %v356_v22  ;;  %v1008_v27 = vpop.f32.mrb[11].mxu0 }
 0x480   :  { %v737_v27 = vrot.slane %v1349_v57, %v736_v25 }
 0x481   :  { %1076 = vrot.lane.b32.xlu1 %v1075_v26, %s1175_s20 }
 0x484   :  { %v481_v28 = vpop.f32.mrb[12].mxu0 }
 0x485   :  { %v1019_v29 = vpop.f32.mrb[13].mxu0 }
 0x486   :  { %v484_v31 = vpop.f32.mrb[14].mxu0  ;;  %v742_v29 = vsub.s32 4, %v1343_v56 }
 0x487   :  { %v1080_v32 = vpack.i.bf16 %v484_v31, %v481_v28  ;;  %v1020_v33 = vpop.f32.mrb[15].mxu0 }
 0x488   :  { %v743_v33 = vrot.slane %v1349_v57, %v742_v29 }
 0x489   :  { %1081 = vrot.lane.b32.xlu0 %v1080_v32, %s1176_s23 }
 0x48c   :  { %v606_v34 = vpop.f32.mrb[16].mxu0 }
 0x48d   :  { %v1031_v35 = vpop.f32.mrb[17].mxu0 }
 0x48e   :  { %v609_v36 = vpop.f32.mrb[18].mxu0 }
 0x48f   :  { %v1085_v37 = vpack.i.bf16 %v609_v36, %v606_v34  ;;  %v1032_v38 = vpop.f32.mrb[19].mxu0 }
 0x490   :  { %v1096_v38 = vld [vmem:[%s1408_s3 + $0x20] sm:$0xff]  }
 0x491   :  { %1086 = vrot.lane.b32.xlu1 %v1085_v37, %s1177_s24 }
 0x4f3   :  { %v1077_v39 = vpop.permute.xlu1 %1076 }
 0x4f4   :  { %v1079_v41 = vunpack.i.h.bf16 %v1077_v39  ;;  %v1078_v42 = vunpack.i.l.bf16 %v1077_v39  ;;  %v1097_v39 = vld [vmem:[%s1408_s3 + $0x28] sm:$0xff]  }
 0x4f6   :  { %v638_v46 = vsel %vm115_vm2, %v234_v20, %v1079_v41  ;;  %v637_v47 = vsel %vm115_vm2, %v231_v18, %v1078_v42  ;;  %v1095_v18 = vld [vmem:[%s1408_s3 + $0x18] sm:$0xff]  }
 0x4fb   :  { %v1082_v40 = vpop.permute.xlu0 %1081 }
 0x4fc   :  { %v1084_v43 = vunpack.i.h.bf16 %v1082_v40  ;;  %v1083_v44 = vunpack.i.l.bf16 %v1082_v40  ;;  %v749_v40 = vsub.s32 1, %v1343_v56 }
 0x4fe   :  { %v640_v50 = vsel %vm167_vm3, %v638_v46, %v1084_v43  ;;  %v639_v51 = vsel %vm167_vm3, %v637_v47, %v1083_v44  ;;  %v750_v41 = vrot.slane %v1349_v57, %v749_v40 }
 0x503   :  { %v1087_v45 = vpop.permute.xlu1 %1086 }
 0x504   :  { %v1089_v48 = vunpack.i.h.bf16 %v1087_v45  ;;  %v1088_v49 = vunpack.i.l.bf16 %v1087_v45 }
 0x506   :  { %v643_v52 = vsel %vm641_vm4, %v640_v50, %v1089_v48  ;;  %v642_v53 = vsel %vm641_vm4, %v639_v51, %v1088_v49 }
 0x507   :  { %v644_v54 = vpack.c.bf16 %v643_v52, %v642_v53 }
 0x509   :  { %1038 = vmatmul.mubr.msk.bf16.vlgmr.msra.gmra.mrb[16].mxu1 %vm66_vm1, %v644_v54 }
 0x50a   :  { %1053 = vmatprep.mubr.msk.bf16.mxu1 %vm1163_vm0, %v1162_v1  ;;  %1050 = vmatpush3.bf16.msra.mxu1 %v1096_v38 }
 0x50b   :  { %1051 = vmatprep.subr.bf16.mxu1 %v1162_v1 }
 0x50e   :  { %1052 = vmatpush3.bf16.msra.mxu1 %v1097_v39 }
 0x5dc   :  { %v698_v59 = vpop.f32.mrb[16].mxu1 }
 0x5dd   :  { %v699_v60 = vadd.f32 %v698_v59, %v648_v58  ;;  %v1039_v61 = vpop.f32.mrb[17].mxu1 }
 0x5de   :  { %v701_v62 = vpop.f32.mrb[18].mxu1 }
 0x5df   :  { %v702_v63 = vadd.f32 %v701_v62, %v648_v58  ;;  %v1040_v0 = vpop.f32.mrb[19].mxu1  ;;  %v705_v2 = vadd.f32 %v699_v60, %v1228_v3 }
 0x5e1   :  { %v707_v5 = vsel %vm66_vm1, %v705_v2, 0.0  ;;  %v706_v6 = vadd.f32 %v702_v63, %v1233_v4  ;;  %v1094_v4 = vld [vmem:[%s1408_s3 + $0x10] sm:$0xff]   ;;  %s1178_s3 = smov [#allocation2]  }
 0x5e2   :  { %708 = vadd.xlane.f32.xlu0 %v707_v5  ;;  %1042 = vmatpush3.bf16.msra.mxu0 %v1094_v4  ;;  %v900_v4 = vsub.s32 5, %v1343_v56  ;;  %s917_s8 = sshll.u32 %s1178_s3, 4  ;;  %s918_s8 = int_to_ptr.vmem [resolvable:$true] %s917_s8 }
 0x5e3   :  { %v710_v7 = vsel %vm66_vm1, %v706_v6, 0.0  ;;  %1043 = vmatprep.subr.bf16.mxu0 %v1162_v1  ;;  %v812_v1 = vsub.s32 2, %v1343_v56  ;;  %s1138_s4 = scalar_lea.vmem %s918_s8, 256  ;;  %p1143_p1 = scmp.lt.s32.totalorder %s918_s8, %s918_s8 }
 0x5e4   :  { %711 = vadd.xlane.f32.xlu1 %v710_v7  ;;  %p1139_p0 = scmp.ne.s32.totalorder %s918_s8, %s1138_s4  ;;  %p1144_p2 = scmp.lt.s32.totalorder %s1138_s4, %s1138_s4 }
 0x5e5   :  { %v813_v51 = vrot.slane %v1349_v57, %v812_v1 }
 0x5e6   :  { %1044 = vmatpush3.bf16.msra.mxu0 %v1095_v18  ;;  %v906_v18 = vsub.s32 6, %v1343_v56  ;;  %p1145_p3 = por %p1144_p2, %p1143_p1 }
 0x5e8   :  { %p1146_p4 = pnand %p1145_p3, %p1139_p0 }
 0x66f   :  { %v709_v8 = vpop.xlane.xlu0 %708 }
 0x670   :  { %v714_v9 = vmul.f32 0.03125, %v709_v8 }
 0x671   :  { %v712_v10 = vpop.xlane.xlu1 %711 }
 0x672   :  { %v716_v11 = vsub.f32 %v705_v2, %v714_v9  ;;  %v715_v12 = vmul.f32 0.03125, %v712_v10 }
 0x674   :  { %v717_v14 = vsub.f32 %v706_v6, %v715_v12  ;;  %v718_v15 = vmul.f32 %v716_v11, %v716_v11 }
 0x676   :  { %v720_v16 = vsel %vm66_vm1, %v718_v15, 0.0  ;;  %v719_v17 = vmul.f32 %v717_v14, %v717_v14 }
 0x677   :  { %721 = vadd.xlane.f32.xlu0 %v720_v16 }
 0x678   :  { %v723_v3 = vsel %vm66_vm1, %v719_v17, 0.0 }
 0x67b   :  { %724 = vadd.xlane.f32.xlu0 %v723_v3 }
 0x704   :  { %v722_v19 = vpop.xlane.xlu0 %721 }
 0x705   :  { %v726_v20 = vmul.f32 0.03125, %v722_v19  ;;  %v901_v19 = vrot.slane %v1349_v57, %v900_v4 }
 0x707   :  { %v728_v21 = vadd.f32 1e-05, %v726_v20 }
 0x708   :  { %v725_v22 = vpop.xlane.xlu0 %724 }
 0x709   :  { %1130 = vrsqrt.f32 %v728_v21  ;;  %v727_v23 = vmul.f32 0.03125, %v725_v22  ;;  %v907_v22 = vrot.slane %v1349_v57, %v906_v18 }
 0x70b   :  { %v729_v24 = vadd.f32 1e-05, %v727_v23 }
 0x70d   :  { %1132 = vrsqrt.f32 %v729_v24 }
 0x713   :  { %v1131_v26 = vpop.eup %1130 }
 0x714   :  { %v732_v28 = vmul.f32 %v1131_v26, %v716_v11 }
 0x716   :  { %v738_v31 = vmul.f32 %v737_v27, %v732_v28 }
 0x717   :  { %v1133_v30 = vpop.eup %1132 }
 0x718   :  { %v733_v32 = vmul.f32 %v1133_v30, %v717_v14  ;;  %v744_v35 = vadd.f32 %v743_v33, %v738_v31 }
 0x71a   :  { %v739_v34 = vmul.f32 %v737_v27, %v733_v32 }
 0x71c   :  { %v745_v36 = vadd.f32 %v743_v33, %v739_v34 }
 0x71e   :  { %v746_v37 = vpack.c.bf16 %v745_v36, %v744_v35 }
 0x720   :  { %1046 = vmatmul.mubr.msk.bf16.vlgmr.msra.gmra.mrb[20].mxu0 %vm66_vm1, %v746_v37 }
 0x7f3   :  { %v800_v42 = vpop.f32.mrb[20].mxu0 }
 0x7f4   :  { %v801_v43 = vadd.f32 %v800_v42, %v750_v41  ;;  %v1047_v44 = vpop.f32.mrb[21].mxu0 }
 0x7f5   :  { %v803_v45 = vpop.f32.mrb[22].mxu0 }
 0x7f6   :  { %v804_v46 = vadd.f32 %v803_v45, %v750_v41  ;;  %v1048_v47 = vpop.f32.mrb[23].mxu0  ;;  %v807_v48 = vmax.f32 %v801_v43, 0.0 }
 0x7f8   :  { %v808_v49 = vmax.f32 %v804_v46, 0.0 }
 0x7fa   :  { %v809_v50 = vpack.c.bf16 %v808_v49, %v807_v48 }
 0x7fc   :  { %1054 = vmatmul.mubr.msk.bf16.vlgmr.msra.gmra.mrb[20].mxu1 %vm66_vm1, %v809_v50 }
 0x8cf   :  { %v863_v52 = vpop.f32.mrb[20].mxu1 }
 0x8d0   :  { %v864_v53 = vadd.f32 %v863_v52, %v813_v51  ;;  %v1055_v54 = vpop.f32.mrb[21].mxu1 }
 0x8d1   :  { %v866_v55 = vpop.f32.mrb[22].mxu1 }
 0x8d2   :  { %v867_v13 = vadd.f32 %v866_v55, %v813_v51  ;;  %v1056_v58 = vpop.f32.mrb[23].mxu1  ;;  %v870_v59 = vadd.f32 %v864_v53, %v744_v35 }
 0x8d4   :  { %v872_v60 = vsel %vm66_vm1, %v870_v59, 0.0  ;;  %v871_v61 = vadd.f32 %v867_v13, %v745_v36 }
 0x8d5   :  { %873 = vadd.xlane.f32.xlu1 %v872_v60 }
 0x8d6   :  { %v875_v62 = vsel %vm66_vm1, %v871_v61, 0.0 }
 0x8d7   :  { %876 = vadd.xlane.f32.xlu0 %v875_v62 }
 0x962   :  { %v874_v63 = vpop.xlane.xlu1 %873 }
 0x963   :  { %v878_v0 = vmul.f32 0.03125, %v874_v63 }
 0x964   :  { %v877_v2 = vpop.xlane.xlu0 %876 }
 0x965   :  { %v880_v5 = vsub.f32 %v870_v59, %v878_v0  ;;  %v879_v6 = vmul.f32 0.03125, %v877_v2 }
 0x967   :  { %v881_v7 = vsub.f32 %v871_v61, %v879_v6  ;;  %v882_v8 = vmul.f32 %v880_v5, %v880_v5 }
 0x969   :  { %v884_v9 = vsel %vm66_vm1, %v882_v8, 0.0  ;;  %v883_v10 = vmul.f32 %v881_v7, %v881_v7 }
 0x96a   :  { %885 = vadd.xlane.f32.xlu1 %v884_v9 }
 0x96b   :  { %v887_v11 = vsel %vm66_vm1, %v883_v10, 0.0 }
 0x96c   :  { %888 = vadd.xlane.f32.xlu0 %v887_v11 }
 0x9f7   :  { %v886_v12 = vpop.xlane.xlu1 %885 }
 0x9f8   :  { %v890_v14 = vmul.f32 0.03125, %v886_v12 }
 0x9f9   :  { %v889_v15 = vpop.xlane.xlu0 %888 }
 0x9fa   :  { %v892_v16 = vadd.f32 1e-05, %v890_v14  ;;  %v891_v17 = vmul.f32 0.03125, %v889_v15 }
 0x9fc   :  { %1134 = vrsqrt.f32 %v892_v16  ;;  %v893_v3 = vadd.f32 1e-05, %v891_v17 }
 0x9fe   :  { %1136 = vrsqrt.f32 %v893_v3 }
 0xa06   :  { %v1135_v20 = vpop.eup %1134 }
 0xa07   :  { %v896_v21 = vmul.f32 %v1135_v20, %v880_v5 }
 0xa08   :  { %v1137_v23 = vpop.eup %1136 }
 0xa09   :  { %v897_v24 = vmul.f32 %v1137_v23, %v881_v7  ;;  %v902_v25 = vmul.f32 %v901_v19, %v896_v21 }
 0xa0b   :  { %v903_v26 = vmul.f32 %v901_v19, %v897_v24  ;;  %v908_v27 = vadd.f32 %v907_v22, %v902_v25 }
 0xa0d   :  { %v909_v28 = vadd.f32 %v907_v22, %v903_v26  ;;  %910 = vst.msk [vmem:[#allocation2] sm:$0xff] %vm66_vm1, %v908_v27 }
 0xa0f   :  { %911 = vst.msk [vmem:[#allocation2 + $0x8] sm:$0xff] %vm66_vm1, %v909_v28 }
 0xa10   :  { %1149 = shalt.err (!%p1146_p4)
}
 0xa11   :  { %s1150_s11 = scalar_lea.hbm %s1411_s6, 256 }
 0xa12   :  { %p1151_p5 = scmp.ne.s32.totalorder %s1411_s6, %s1150_s11  ;;  %p1154_p6 = scmp.lt.u32.totalorder %s1150_s11, %s1411_s6 }
 0xa14   :  { %p1156_p7 = pnand %p1154_p6, %p1151_p5 }
 0xa16   :  { %1159 = shalt.err (!%p1156_p7)
}
 0xa17   :  { %s1179_s15 = smov 128  }
 0xa18   :  { %923 = dma.vmem_to_hbm [thread:$0]  %s918_s8, 256, %s1411_s6, [#allocation3], %s1179_s15, %s1179_s15, %s1175_s20  }
 0xa19   :  { %1160 = dma.done.wait [#allocation3], 256  }
 0xa1a   :  { %1161 = vsyncadd [#allocation3], 4294967040 }
 0xa1b   :  { %927 = vsyncpa [#allocation3], 1 }

</bundles_post_ra>
